<compile_context>
chip_gen: v5e
topology: v5e:2x2
jax: 0.10.0
libtpu: 0.0.40
codegen_flags: <defaults>
</compile_context>

<pallas_src>
import numpy as np
import jax
import jax.numpy as jnp
from jax.experimental import pallas as pl
from jax.experimental.pallas import tpu as pltpu


def make_positional_encoding(d_model: int, max_len: int = 400) -> jnp.ndarray:
    """Build the (max_len, d_model) sin/cos table exactly as in __init__."""
    position = np.arange(0, max_len, dtype=np.float32)[:, None]
    div_term = np.exp(
        np.arange(0, d_model, 2, dtype=np.float32) * (-np.log(10000.0) / d_model)
    )
    div_term2 = np.exp(
        np.arange(0, d_model - 1, 2, dtype=np.float32) * (-np.log(10000.0) / d_model)
    )
    pe = np.zeros((max_len, d_model), dtype=np.float32)
    pe[:, 0::2] = np.sin(position * div_term)
    pe[:, 1::2] = np.cos(position * div_term2)
    return jnp.asarray(pe)


def _pe_add_kernel(x_ref, pe_ref, o_ref):
    # Eval-mode forward (nn.Dropout is identity in eval): elementwise add on VPU.
    o_ref[...] = x_ref[...] + pe_ref[...]


def _pe_add_dropout_kernel(x_ref, pe_ref, scale_ref, o_ref):
    # Training-mode forward: (x + pe) * keep_scale, with keep_scale in
    # {0, 1/(1-rate)} precomputed outside the kernel (same dropout semantics as
    # nn.Dropout, different RNG stream than torch).
    o_ref[...] = (x_ref[...] + pe_ref[...]) * scale_ref[...]


# Row-tile size: multiple of 8 (sublane aligned); 256 rows x D keeps VMEM tiny
# even with double-buffering on v7x (64 MiB physical / 32 MiB scoped default).
_MAX_TILE_ROWS = 256


def positional_encoding_forward(x, pe, *, dropout=0.1, training=False, rng=None):
    """x: (S, D) float32, pe: (max_len, D) float32 -> (S, 1, D) float32."""
    S, D = x.shape
    max_len = pe.shape[0]
    assert S <= max_len, "sequence longer than positional-encoding table"

    # Pick the row tile.  TS must be a multiple of 8 (so the same block shape
    # is legal against both x (S rows) and the full pe table (max_len rows)),
    # or equal to the full row extent of both arrays.
    if S <= _MAX_TILE_ROWS:
        ts = S
    else:
        ts = _MAX_TILE_ROWS

    pe_in = pe
    if ts % 8 != 0 and ts != max_len:
        # Ragged row count: fall back to slicing pe so both operands share the
        # full-extent block shape.  (Costs one extra copy of S*D floats.)
        # TODO(synk): pad S up to a multiple of 8 instead to keep the
        # zero-copy pe indexing for ragged sequence lengths.
        pe_in = pe[:S]

    grid = (pl.cdiv(S, ts),)
    row_spec = pl.BlockSpec((ts, D), lambda i: (i, 0))
    cparams = pltpu.CompilerParams(dimension_semantics=("parallel",))

    if (not training) or dropout == 0.0:
        out2d = pl.pallas_call(
            _pe_add_kernel,
            out_shape=jax.ShapeDtypeStruct((S, D), x.dtype),
            grid=grid,
            in_specs=[row_spec, row_spec],
            out_specs=row_spec,
            compiler_params=cparams,
        )(x, pe_in)
    else:
        if rng is None:
            rng = jax.random.PRNGKey(0)
        keep = jax.random.bernoulli(rng, p=1.0 - float(dropout), shape=(S, D))
        scale = keep.astype(x.dtype) * jnp.asarray(1.0 / (1.0 - float(dropout)), x.dtype)
        out2d = pl.pallas_call(
            _pe_add_dropout_kernel,
            out_shape=jax.ShapeDtypeStruct((S, D), x.dtype),
            grid=grid,
            in_specs=[row_spec, row_spec, row_spec],
            out_specs=row_spec,
            compiler_params=cparams,
        )(x, pe_in, scale)

    # matches: x.unsqueeze(1) + pe[:S]  -> shape (S, 1, D)
    return out2d[:, None, :]


if __name__ == "__main__":
    key = jax.random.PRNGKey(0)
    k_x1, k_x2, k_drop = jax.random.split(key, 3)

    D = 128            # d_model (lane-aligned)
    max_len = 400
    pe = make_positional_encoding(D, max_len=max_len)

    # --- Case 1: S = 400 exercises the tiled grid (2 row tiles, partial last
    # block) in eval mode (dropout is identity). -----------------------------
    S = 400
    x = jax.random.normal(k_x1, (S, D), dtype=jnp.float32)
    out = positional_encoding_forward(x, pe, dropout=0.1, training=False)
    out = jax.block_until_ready(out)
    assert out.shape == (S, 1, D)
    ref = x[:, None, :] + np.asarray(pe)[:S][:, None, :]
    np.testing.assert_allclose(np.asarray(out), np.asarray(ref), rtol=1e-6, atol=1e-6)

    # --- Case 2: small S, single-block path. --------------------------------
    S2 = 16
    x2 = jax.random.normal(k_x2, (S2, D), dtype=jnp.float32)
    out2 = positional_encoding_forward(x2, pe, dropout=0.1, training=False)
    out2 = jax.block_until_ready(out2)
    assert out2.shape == (S2, 1, D)
    ref2 = x2[:, None, :] + np.asarray(pe)[:S2][:, None, :]
    np.testing.assert_allclose(np.asarray(out2), np.asarray(ref2), rtol=1e-6, atol=1e-6)

    # --- Case 3: training-mode forward with fused dropout multiply. ---------
    rate = 0.1
    out_tr = positional_encoding_forward(
        x, pe, dropout=rate, training=True, rng=k_drop
    )
    out_tr = jax.block_until_ready(out_tr)
    assert out_tr.shape == (S, 1, D)
    out_tr_np = np.asarray(out_tr)[:, 0, :]
    assert np.all(np.isfinite(out_tr_np))
    # Every element is either dropped (0) or equals (x + pe) / (1 - rate).
    scaled = np.asarray(ref)[:, 0, :] / (1.0 - rate)
    ok = np.isclose(out_tr_np, 0.0, atol=1e-6) | np.isclose(
        out_tr_np, scaled, rtol=1e-5, atol=1e-6
    )
    assert ok.all()
    # Dropout actually dropped roughly `rate` of the elements.
    frac_zero = float(np.mean(np.isclose(out_tr_np, 0.0, atol=1e-6)))
    assert 0.02 < frac_zero < 0.3

    print("KERNEL_OK")
</pallas_src>

<mosaic_0001>
module attributes {stable_mosaic.version = 11 : i64} {
  func.func @_pe_add_kernel(%arg0: i32, %arg1: memref<256x128xf32, #tpu.memory_space<vmem>>, %arg2: memref<256x128xf32, #tpu.memory_space<vmem>>, %arg3: memref<256x128xf32, #tpu.memory_space<vmem>>) attributes {dimension_semantics = [#tpu.dimension_semantics<parallel>], iteration_bounds = array<i64: 2>, scalar_prefetch = 0 : i64, scratch_operands = 0 : i64, tpu.core_type = #tpu.core_type<tc>, window_params = [{transform_indices = @transform_0, window_bounds = array<i64: 256, 128>}, {transform_indices = @transform_1, window_bounds = array<i64: 256, 128>}, {transform_indices = @transform_2, window_bounds = array<i64: 256, 128>}]} {
    %c0 = arith.constant 0 : index
    %c0_0 = arith.constant 0 : index
    %0 = vector.load %arg1[%c0, %c0_0] : memref<256x128xf32, #tpu.memory_space<vmem>>, vector<256x128xf32>
    %c0_1 = arith.constant 0 : index
    %c0_2 = arith.constant 0 : index
    %1 = vector.load %arg2[%c0_1, %c0_2] : memref<256x128xf32, #tpu.memory_space<vmem>>, vector<256x128xf32>
    %2 = arith.addf %0, %1 : vector<256x128xf32>
    %c0_3 = arith.constant 0 : index
    %c0_4 = arith.constant 0 : index
    %3 = vector.load %arg3[%c0_3, %c0_4] : memref<256x128xf32, #tpu.memory_space<vmem>>, vector<256x128xf32>
    tpu.vector_store %arg3[%c0_3, %c0_4], %2 {strides = array<i32>} : memref<256x128xf32, #tpu.memory_space<vmem>>, vector<256x128xf32>,
    return
  }
  func.func @transform_0(%arg0: i32) -> (i32, i32) {
    %c0_i32 = arith.constant 0 : i32
    %c0_i32_0 = arith.constant 0 : i32
    return %arg0, %c0_i32 : i32, i32
  }
  func.func @transform_1(%arg0: i32) -> (i32, i32) {
    %c0_i32 = arith.constant 0 : i32
    %c0_i32_0 = arith.constant 0 : i32
    return %arg0, %c0_i32 : i32, i32
  }
  func.func @transform_2(%arg0: i32) -> (i32, i32) {
    %c0_i32 = arith.constant 0 : i32
    %c0_i32_0 = arith.constant 0 : i32
    return %arg0, %c0_i32 : i32, i32
  }
}

</mosaic_0001>

<bundles_post_ra>
// kernel: tpu_custom_call.1
= control target key start
LH: loop header
LB: loop body
LE: loop exit
PB: predicated region body
PF: predicated region fallthrough
CT: control target
= control target key end

     0   :  { %7 = vsyncpa [#allocation3], 0  ;;  %s1080_s0 = inlined_call_operand.hbm [shape: f32[400,128], index: 0, kind: input, shape index: {}]   ;;  %s1081_s1 = inlined_call_operand.hbm [shape: f32[400,128], index: 1, kind: input, shape index: {}]   ;;  %s1082_s2 = inlined_call_operand.hbm [shape: f32[400,128], index: 2, kind: output, shape index: {}]  }
   0x1   :  { %9 = vsyncpa [#allocation3 + $0x1], 0 }
   0x2   :  { %10 = vsyncpa [#allocation6], 0 }
   0x3   :  { %12 = vsyncpa [#allocation6 + $0x1], 0 }
   0x4   :  { %13 = vsyncpa [#allocation4], 0 }
   0x5   :  { %15 = vsyncpa [#allocation4 + $0x1], 0  ;;  %s746_s9 = smov 0   ;;  %s748_s10 = smov 0  }
   0x6   :  { %s750_s11 = smov 0   ;;  %s752_s12 = smov 0  }
   0x7 LB: > { %s767_s13 = sadd.s32 4294967295, %s720_s12   ;;  %s482_s14 = sadd.s32 4294967294, %s720_s12   ;;  %s720_s12 = sphi %s752_s12, %s1096_s12   ;;  %s716_s11 = sphi %s750_s11, %s1095_s11   ;;  %s712_s10 = sphi %s748_s10, %s1094_s10   ;;  %s708_s9 = sphi %s746_s9, %s1093_s9  }
   0x8   : > { %s771_s15 = sadd.s32 1, %s720_s12   ;;  %s28_s16 = sadd.s32 1, %s716_s11 }
   0x9   : > { %s25_s17 = ssub.s32 %s720_s12, %s771_s15  ;;  %p35_p0 = scmp.ne.s32.totalorder %s716_s11, %s712_s10 }
   0xa   : > { %p26_p1 = scmp.eq.s32.totalorder %s25_s17, 0  ;;  %p36_p2 = scmp.eq.s32.totalorder %s720_s12, 0 }
   0xb   : > { %p41_p3 = scmp.ne.s32.totalorder %s712_s10, %s708_s9  ;;  %p42_p4 = scmp.eq.s32.totalorder %s767_s13, 0 }
   0xc   : > { %s783_s18 = scalar_select %p26_p1, %s716_s11, %s28_s16  }
   0xd   : > { %p785_p5 = por %p36_p2, %p35_p0  ;;  %p789_p6 = por %p42_p4, %p41_p3 }
   0xe   : > { %p91_p7 = scmp.eq.s32.totalorder %s767_s13, 1  ;;  %p97_p8 = scmp.eq.s32.totalorder %s482_s14, 1 }
   0xf   : > { %p1083_p11 = scmp.ge.s32.totalorder %s720_s12, 2 }
  0x10   : > { %p794_p9 = por %p91_p7, %p35_p0  ;;  %p798_p10 = por %p97_p8, %p41_p3 }
  0x11   : > { %113 = sbr.rel (%p1083_p11) target bundleno = 94 (0x5e), region = 16 }
  0x12   : > { %s1087_s22 = scalar_select %p798_p10, 1, 0 }
  0x16   : > { %116 = sbr.rel (!%p785_p5) target bundleno = 58 (0x3a), region = 20  ;;  %s117_s23 = sand.u32 (%p785_p5), 1, %s716_s11  }
  0x17   : > { %s486_s24 = sshll.u32 (%p785_p5), %s720_s12, 5  ;;  %s485_s25 = sshll.u32 (%p785_p5), %s117_s23, 8 }
  0x18   : > { %s123_s26 = ssub.s32 (%p785_p5), 50, %s486_s24  ;;  %s812_s30 = scalar_lea.sflag (%p785_p5), [#allocation3], %s117_s23 }
  0x19   : > { %p124_p12 = scmp.lt.s32.totalorder (%p785_p5), %s123_s26, 32  ;;  %s121_s3 = scalar_lea.vmem (%p785_p5), [#allocation2], %s485_s25 }
  0x1b   : > { %s1098_s26 = smov (!%p124_p12, %s123_s26), 32 }
  0x1c   : > { %s487_s27 = sshll.u32 %s1098_s26, 3 }
  0x1d   : > { %s127_s28 = ssub.s32 256, %s487_s27 }
  0x1e   : > { %s128_s29 = sshll.u32 %s127_s28, 4 }
  0x1f   : > { %129 = vsyncadd %s812_s30, %s128_s29  ;;  %p815_p13 = scmp.ne.s32.totalorder %s487_s27, 0  ;;  %s512_s5 = sshll.u32 %s720_s12, 8 }
  0x20   : > { %s132_s8 = scalar_lea.hbm %s1080_s0, %s512_s5  ;;  %s823_s14 = sshll.u32 %s121_s3, 4  ;;  %s137_s14 = int_to_ptr.vmem [resolvable:$true] %s823_s14 }
  0x21   : > { %s134_s16 = sshll.u32 %s132_s8, 4  ;;  %s491_s17 = sshll.u32 %s1098_s26, 7  ;;  %s826_s16 = int_to_ptr.hbm [resolvable:$true] %s134_s16 }
  0x22   : > { %s561_s23 = sshra.s32 %s826_s16, 4  ;;  %s563_s24 = sshrl.u32 %s491_s17, 4  ;;  %s562_s23 = int_to_ptr.hbm [resolvable:$true] %s561_s23 }
  0x23   : > { %s568_s25 = scalar_lea.hbm %s562_s23, %s563_s24  ;;  %s572_s29 = scalar_lea.hbm %s1080_s0, 400 }
  0x24   : > { %p569_p0 = scmp.ne.s32.totalorder %s562_s23, %s568_s25  ;;  %p573_p3 = scmp.lt.s32.totalorder %s562_s23, %s1080_s0 }
  0x25   : > { %p574_p4 = scmp.lt.s32.totalorder %s572_s29, %s568_s25 }
  0x26   : > { %p570_p1 = pnand %p569_p0, %p815_p13 }
  0x27   : > { %p575_p7 = por %p574_p4, %p573_p3 }
  0x28   : > { %p571_p2 = pneg %p570_p1 }
  0x2a   : > { %p576_p8 = pnand %p575_p7, %p571_p2 }
  0x2c   : > { %579 = shalt.err (!%p576_p8)
}
  0x2d   : > { %s580_s6 = sshra.s32 %s137_s14, 4  ;;  %s722_s8 = smov [#allocation2]   ;;  %s581_s6 = int_to_ptr.vmem [resolvable:$true] %s580_s6 }
  0x2e   : > { %s587_s7 = scalar_lea.vmem %s581_s6, %s563_s24  ;;  %s591_s27 = scalar_lea.vmem %s722_s8, 512 }
  0x2f   : > { %p588_p12 = scmp.ne.s32.totalorder %s581_s6, %s587_s7  ;;  %p593_p11 = scmp.lt.s32.totalorder %s591_s27, %s587_s7 }
  0x31   : > { %p589_p0 = pnand %p588_p12, %p815_p13 }
  0x33   : > { %p590_p1 = pneg %p589_p0 }
  0x35   : > { %p595_p10 = pnand %p593_p11, %p590_p1 }
  0x37   : > { %598 = shalt.err (!%p595_p10)
}
  0x38   : > { %s723_s23 = smov 128   ;;  %s724_s25 = smov 8  }
  0x39   : > { %142 = dma.hbm_to_vmem [thread:$0]  (%p815_p13), %s826_s16, %s491_s17, %s137_s14, %s812_s30, %s723_s23, %s723_s23, %s724_s25  }
  0x3a PF: > { %145 = sbr.rel (!%p785_p5) target bundleno = 94 (0x5e), region = 24  ;;  %s146_s24 = sand.u32 (%p785_p5), 1, %s716_s11  }
  0x3b   : > { %s493_s28 = sshll.u32 (%p785_p5), %s720_s12, 5  ;;  %s492_s29 = sshll.u32 (%p785_p5), %s146_s24, 8 }
  0x3c   : > { %s152_s3 = ssub.s32 (%p785_p5), 50, %s493_s28  ;;  %s859_s7 = scalar_lea.sflag (%p785_p5), [#allocation6], %s146_s24 }
  0x3d   : > { %p153_p10 = scmp.lt.s32.totalorder (%p785_p5), %s152_s3, 32  ;;  %s150_s26 = scalar_lea.vmem (%p785_p5), [#allocation5], %s492_s29 }
  0x3f   : > { %s1100_s3 = smov (!%p153_p10, %s152_s3), 32 }
  0x40   : > { %s494_s5 = sshll.u32 %s1100_s3, 3 }
  0x41   : > { %s156_s6 = ssub.s32 256, %s494_s5 }
  0x42   : > { %s157_s4 = sshll.u32 %s156_s6, 4 }
  0x43   : > { %158 = vsyncadd %s859_s7, %s157_s4  ;;  %p862_p5 = scmp.ne.s32.totalorder %s494_s5, 0  ;;  %s513_s30 = sshll.u32 %s720_s12, 8 }
  0x44   : > { %s161_s17 = scalar_lea.hbm %s1081_s1, %s513_s30  ;;  %s870_s8 = sshll.u32 %s150_s26, 4  ;;  %s166_s8 = int_to_ptr.vmem [resolvable:$true] %s870_s8 }
  0x45   : > { %s163_s27 = sshll.u32 %s161_s17, 4  ;;  %s498_s23 = sshll.u32 %s1100_s3, 7  ;;  %s873_s27 = int_to_ptr.hbm [resolvable:$true] %s163_s27 }
  0x46   : > { %s600_s25 = sshra.s32 %s873_s27, 4  ;;  %s602_s24 = sshrl.u32 %s498_s23, 4  ;;  %s601_s25 = int_to_ptr.hbm [resolvable:$true] %s600_s25 }
  0x47   : > { %s607_s28 = scalar_lea.hbm %s601_s25, %s602_s24  ;;  %s611_s6 = scalar_lea.hbm %s1081_s1, 400 }
  0x48   : > { %p608_p11 = scmp.ne.s32.totalorder %s601_s25, %s607_s28  ;;  %p612_p3 = scmp.lt.s32.totalorder %s601_s25, %s1081_s1 }
  0x49   : > { %p613_p4 = scmp.lt.s32.totalorder %s611_s6, %s607_s28 }
  0x4a   : > { %p609_p13 = pnand %p608_p11, %p862_p5 }
  0x4b   : > { %p614_p7 = por %p613_p4, %p612_p3 }
  0x4c   : > { %p610_p2 = pneg %p609_p13 }
  0x4e   : > { %p615_p8 = pnand %p614_p7, %p610_p2 }
  0x50   : > { %618 = shalt.err (!%p615_p8)
}
  0x51   : > { %s619_s30 = sshra.s32 %s166_s8, 4  ;;  %s725_s16 = smov [#allocation5]   ;;  %s620_s30 = int_to_ptr.vmem [resolvable:$true] %s619_s30 }
  0x52   : > { %s626_s14 = scalar_lea.vmem %s620_s30, %s602_s24  ;;  %s630_s17 = scalar_lea.vmem %s725_s16, 512 }
  0x53   : > { %p627_p12 = scmp.ne.s32.totalorder %s620_s30, %s626_s14  ;;  %p632_p10 = scmp.lt.s32.totalorder %s630_s17, %s626_s14 }
  0x55   : > { %p628_p0 = pnand %p627_p12, %p862_p5 }
  0x57   : > { %p629_p1 = pneg %p628_p0 }
  0x59   : > { %p634_p11 = pnand %p632_p10, %p629_p1 }
  0x5b   : > { %637 = shalt.err (!%p634_p11)
}
  0x5c   : > { %s726_s25 = smov 128   ;;  %s727_s28 = smov 8  }
  0x5d   : > { %171 = dma.hbm_to_vmem [thread:$0]  (%p862_p5), %s873_s27, %s498_s23, %s166_s8, %s859_s7, %s726_s25, %s726_s25, %s727_s28  }
  0x5e PF: > { %p499_p13 = scmp.ge.s32.totalorder %s720_s12, 1  ;;  %p173_p2 = scmp.lt.s32.totalorder %s720_s12, 3 }
  0x60   : > { %p174_p3 = pnand %p499_p13, %p173_p2 }
  0x61   : > { %s902_s24 = sand.u32 (!%p174_p3), 1, %s712_s10  }
  0x62   : > { %177 = sbr.rel (%p174_p3) target bundleno = 173 (0xad), region = 28  ;;  %s500_s29 = sshll.u32 (!%p174_p3), %s902_s24, 8 }
  0x63   : > { %s180_s5 = scalar_lea.sflag (!%p174_p3), [#allocation3], %s902_s24  ;;  %s906_s19 = scalar_lea.vmem (!%p174_p3), [#allocation2], %s500_s29 }
  0x67   : > { %695 = dma.done.wait (%p789_p6), %s180_s5, 4096  }
  0x68   : > { %697 = vsyncadd (%p789_p6), %s180_s5, 4294963200  ;;  %s190_s3 = scalar_lea.sflag [#allocation6], %s902_s24  ;;  %s913_s7 = scalar_lea.vmem [#allocation5], %s500_s29 }
  0x69   : > { %699 = dma.done.wait (%p789_p6), %s190_s3, 4096  }
  0x6a   : > { %701 = vsyncadd (%p789_p6), %s190_s3, 4294963200  ;;  %v235_v0 = vld [vmem:[%s906_s19] sm:$0xff]  ;;  %v236_v2 = vld [vmem:[%s906_s19 + $0x8] sm:$0xff]  ;;  %s928_s20 = scalar_lea.vmem [#allocation7], %s500_s29  ;;  %s364_s8 = scalar_lea.sflag [#allocation4], %s902_s24 }
  0x6b   : > { %v267_v1 = vld [vmem:[%s913_s7] sm:$0xff]  ;;  %v268_v4 = vld [vmem:[%s913_s7 + $0x8] sm:$0xff]  ;;  %v237_v5 = vld [vmem:[%s906_s19 + $0x10] sm:$0xff]  ;;  %s504_s27 = sshll.u32 (%p794_p9), %s767_s13, 5 }
  0x6c   : > { %v299_v3 = vadd.f32 %v267_v1, %v235_v0  ;;  %v269_v6 = vld [vmem:[%s913_s7 + $0x10] sm:$0xff]  ;;  %v300_v7 = vadd.f32 %v268_v4, %v236_v2  ;;  %v238_v9 = vld [vmem:[%s906_s19 + $0x18] sm:$0xff]  ;;  %v239_v11 = vld [vmem:[%s906_s19 + $0x20] sm:$0xff]  ;;  %s372_s23 = ssub.s32 (%p794_p9), 50, %s504_s27 }
  0x6d   : > { %v301_v8 = vadd.f32 %v269_v6, %v237_v5  ;;  %v270_v10 = vld [vmem:[%s913_s7 + $0x18] sm:$0xff]  ;;  %v271_v13 = vld [vmem:[%s913_s7 + $0x20] sm:$0xff]  ;;  %v240_v14 = vld [vmem:[%s906_s19 + $0x28] sm:$0xff]  ;;  %p373_p6 = scmp.lt.s32.totalorder (%p794_p9), %s372_s23, 32 }
  0x6e   : > { %331 = vst [vmem:[%s928_s20] sm:$0xff] %v299_v3  ;;  %v302_v12 = vadd.f32 %v270_v10, %v238_v9  ;;  %v272_v15 = vld [vmem:[%s913_s7 + $0x28] sm:$0xff]  ;;  %v303_v16 = vadd.f32 %v271_v13, %v239_v11  ;;  %v241_v18 = vld [vmem:[%s906_s19 + $0x30] sm:$0xff]  ;;  %v242_v20 = vld [vmem:[%s906_s19 + $0x38] sm:$0xff] }
  0x6f   : > { %332 = vst [vmem:[%s928_s20 + $0x8] sm:$0xff] %v300_v7  ;;  %v304_v17 = vadd.f32 %v272_v15, %v240_v14  ;;  %v273_v19 = vld [vmem:[%s913_s7 + $0x30] sm:$0xff]  ;;  %v274_v22 = vld [vmem:[%s913_s7 + $0x38] sm:$0xff]  ;;  %v243_v23 = vld [vmem:[%s906_s19 + $0x40] sm:$0xff] }
  0x70   : > { %333 = vst [vmem:[%s928_s20 + $0x10] sm:$0xff] %v301_v8  ;;  %v305_v21 = vadd.f32 %v273_v19, %v241_v18  ;;  %v275_v24 = vld [vmem:[%s913_s7 + $0x40] sm:$0xff]  ;;  %v306_v25 = vadd.f32 %v274_v22, %v242_v20  ;;  %v244_v26 = vld [vmem:[%s906_s19 + $0x48] sm:$0xff]  ;;  %v245_v28 = vld [vmem:[%s906_s19 + $0x50] sm:$0xff] }
  0x71   : > { %334 = vst [vmem:[%s928_s20 + $0x18] sm:$0xff] %v302_v12  ;;  %v276_v27 = vld [vmem:[%s913_s7 + $0x48] sm:$0xff]  ;;  %v307_v29 = vadd.f32 %v275_v24, %v243_v23  ;;  %v277_v30 = vld [vmem:[%s913_s7 + $0x50] sm:$0xff]  ;;  %v246_v31 = vld [vmem:[%s906_s19 + $0x58] sm:$0xff] }
  0x72   : > { %335 = vst [vmem:[%s928_s20 + $0x20] sm:$0xff] %v303_v16  ;;  %v278_v32 = vld [vmem:[%s913_s7 + $0x58] sm:$0xff]  ;;  %v308_v33 = vadd.f32 %v276_v27, %v244_v26  ;;  %v247_v34 = vld [vmem:[%s906_s19 + $0x60] sm:$0xff]  ;;  %v309_v36 = vadd.f32 %v277_v30, %v245_v28  ;;  %v248_v37 = vld [vmem:[%s906_s19 + $0x68] sm:$0xff] }
  0x73   : > { %336 = vst [vmem:[%s928_s20 + $0x28] sm:$0xff] %v304_v17  ;;  %v279_v35 = vld [vmem:[%s913_s7 + $0x60] sm:$0xff]  ;;  %v280_v38 = vld [vmem:[%s913_s7 + $0x68] sm:$0xff]  ;;  %v310_v39 = vadd.f32 %v278_v32, %v246_v31  ;;  %v249_v40 = vld [vmem:[%s906_s19 + $0x70] sm:$0xff] }
  0x74   : > { %337 = vst [vmem:[%s928_s20 + $0x30] sm:$0xff] %v305_v21  ;;  %v281_v41 = vld [vmem:[%s913_s7 + $0x70] sm:$0xff]  ;;  %v311_v42 = vadd.f32 %v279_v35, %v247_v34  ;;  %v250_v43 = vld [vmem:[%s906_s19 + $0x78] sm:$0xff]  ;;  %v312_v45 = vadd.f32 %v280_v38, %v248_v37  ;;  %v251_v46 = vld [vmem:[%s906_s19 + $0x80] sm:$0xff] }
  0x75   : > { %338 = vst [vmem:[%s928_s20 + $0x38] sm:$0xff] %v306_v25  ;;  %v282_v44 = vld [vmem:[%s913_s7 + $0x78] sm:$0xff]  ;;  %v283_v47 = vld [vmem:[%s913_s7 + $0x80] sm:$0xff]  ;;  %v313_v48 = vadd.f32 %v281_v41, %v249_v40  ;;  %v252_v49 = vld [vmem:[%s906_s19 + $0x88] sm:$0xff] }
  0x76   : > { %339 = vst [vmem:[%s928_s20 + $0x40] sm:$0xff] %v307_v29  ;;  %v284_v50 = vld [vmem:[%s913_s7 + $0x88] sm:$0xff]  ;;  %v314_v51 = vadd.f32 %v282_v44, %v250_v43  ;;  %v253_v52 = vld [vmem:[%s906_s19 + $0x90] sm:$0xff]  ;;  %v315_v54 = vadd.f32 %v283_v47, %v251_v46  ;;  %v254_v55 = vld [vmem:[%s906_s19 + $0x98] sm:$0xff] }
  0x77   : > { %340 = vst [vmem:[%s928_s20 + $0x48] sm:$0xff] %v308_v33  ;;  %v285_v53 = vld [vmem:[%s913_s7 + $0x90] sm:$0xff]  ;;  %v286_v56 = vld [vmem:[%s913_s7 + $0x98] sm:$0xff]  ;;  %v316_v57 = vadd.f32 %v284_v50, %v252_v49  ;;  %v255_v58 = vld [vmem:[%s906_s19 + $0xa0] sm:$0xff] }
  0x78   : > { %341 = vst [vmem:[%s928_s20 + $0x50] sm:$0xff] %v309_v36  ;;  %v287_v59 = vld [vmem:[%s913_s7 + $0xa0] sm:$0xff]  ;;  %v317_v60 = vadd.f32 %v285_v53, %v253_v52  ;;  %v256_v61 = vld [vmem:[%s906_s19 + $0xa8] sm:$0xff]  ;;  %v318_v63 = vadd.f32 %v286_v56, %v254_v55  ;;  %v257_v0 = vld [vmem:[%s906_s19 + $0xb0] sm:$0xff] }
  0x79   : > { %342 = vst [vmem:[%s928_s20 + $0x58] sm:$0xff] %v310_v39  ;;  %v288_v62 = vld [vmem:[%s913_s7 + $0xa8] sm:$0xff]  ;;  %v289_v1 = vld [vmem:[%s913_s7 + $0xb0] sm:$0xff]  ;;  %v319_v2 = vadd.f32 %v287_v59, %v255_v58  ;;  %v258_v3 = vld [vmem:[%s906_s19 + $0xb8] sm:$0xff] }
  0x7a   : > { %343 = vst [vmem:[%s928_s20 + $0x60] sm:$0xff] %v311_v42  ;;  %v290_v4 = vld [vmem:[%s913_s7 + $0xb8] sm:$0xff]  ;;  %v320_v5 = vadd.f32 %v288_v62, %v256_v61  ;;  %v259_v6 = vld [vmem:[%s906_s19 + $0xc0] sm:$0xff]  ;;  %v321_v8 = vadd.f32 %v289_v1, %v257_v0  ;;  %v260_v9 = vld [vmem:[%s906_s19 + $0xc8] sm:$0xff] }
  0x7b   : > { %344 = vst [vmem:[%s928_s20 + $0x68] sm:$0xff] %v312_v45  ;;  %v291_v7 = vld [vmem:[%s913_s7 + $0xc0] sm:$0xff]  ;;  %v292_v10 = vld [vmem:[%s913_s7 + $0xc8] sm:$0xff]  ;;  %v322_v11 = vadd.f32 %v290_v4, %v258_v3  ;;  %v261_v12 = vld [vmem:[%s906_s19 + $0xd0] sm:$0xff] }
  0x7c   : > { %345 = vst [vmem:[%s928_s20 + $0x70] sm:$0xff] %v313_v48  ;;  %v293_v13 = vld [vmem:[%s913_s7 + $0xd0] sm:$0xff]  ;;  %v323_v14 = vadd.f32 %v291_v7, %v259_v6  ;;  %v262_v15 = vld [vmem:[%s906_s19 + $0xd8] sm:$0xff]  ;;  %v324_v17 = vadd.f32 %v292_v10, %v260_v9  ;;  %v263_v18 = vld [vmem:[%s906_s19 + $0xe0] sm:$0xff] }
  0x7d   : > { %346 = vst [vmem:[%s928_s20 + $0x78] sm:$0xff] %v314_v51  ;;  %v294_v16 = vld [vmem:[%s913_s7 + $0xd8] sm:$0xff]  ;;  %v295_v19 = vld [vmem:[%s913_s7 + $0xe0] sm:$0xff]  ;;  %v325_v20 = vadd.f32 %v293_v13, %v261_v12  ;;  %v264_v21 = vld [vmem:[%s906_s19 + $0xe8] sm:$0xff] }
  0x7e   : > { %347 = vst [vmem:[%s928_s20 + $0x80] sm:$0xff] %v315_v54  ;;  %v296_v22 = vld [vmem:[%s913_s7 + $0xe8] sm:$0xff]  ;;  %v326_v23 = vadd.f32 %v294_v16, %v262_v15  ;;  %v265_v24 = vld [vmem:[%s906_s19 + $0xf0] sm:$0xff]  ;;  %v327_v26 = vadd.f32 %v295_v19, %v263_v18  ;;  %v266_v27 = vld [vmem:[%s906_s19 + $0xf8] sm:$0xff] }
  0x7f   : > { %348 = vst [vmem:[%s928_s20 + $0x88] sm:$0xff] %v316_v57  ;;  %v297_v25 = vld [vmem:[%s913_s7 + $0xf0] sm:$0xff]  ;;  %v298_v28 = vld [vmem:[%s913_s7 + $0xf8] sm:$0xff]  ;;  %v328_v29 = vadd.f32 %v296_v22, %v264_v21 }
  0x80   : > { %349 = vst [vmem:[%s928_s20 + $0x90] sm:$0xff] %v317_v60  ;;  %v329_v30 = vadd.f32 %v297_v25, %v265_v24  ;;  %v330_v31 = vadd.f32 %v298_v28, %v266_v27 }
  0x81   : > { %350 = vst [vmem:[%s928_s20 + $0x98] sm:$0xff] %v318_v63 }
  0x82   : > { %351 = vst [vmem:[%s928_s20 + $0xa0] sm:$0xff] %v319_v2 }
  0x83   : > { %352 = vst [vmem:[%s928_s20 + $0xa8] sm:$0xff] %v320_v5 }
  0x84   : > { %353 = vst [vmem:[%s928_s20 + $0xb0] sm:$0xff] %v321_v8 }
  0x85   : > { %354 = vst [vmem:[%s928_s20 + $0xb8] sm:$0xff] %v322_v11 }
  0x86   : > { %355 = vst [vmem:[%s928_s20 + $0xc0] sm:$0xff] %v323_v14 }
  0x87   : > { %356 = vst [vmem:[%s928_s20 + $0xc8] sm:$0xff] %v324_v17 }
  0x88   : > { %357 = vst [vmem:[%s928_s20 + $0xd0] sm:$0xff] %v325_v20 }
  0x89   : > { %358 = vst [vmem:[%s928_s20 + $0xd8] sm:$0xff] %v326_v23  ;;  %370 = sbr.rel (!%p794_p9) target bundleno = 173 (0xad), region = 40 }
  0x8a   : > { %359 = vst [vmem:[%s928_s20 + $0xe0] sm:$0xff] %v327_v26 }
  0x8b   : > { %360 = vst [vmem:[%s928_s20 + $0xe8] sm:$0xff] %v328_v29 }
  0x8c   : > { %361 = vst [vmem:[%s928_s20 + $0xf0] sm:$0xff] %v329_v30 }
  0x8d   : > { %362 = vst [vmem:[%s928_s20 + $0xf8] sm:$0xff] %v330_v31 }
  0x8e   : > { %s1102_s23 = smov (!%p373_p6, %s372_s23), 32 }
  0x8f   : > { %s505_s6 = sshll.u32 %s1102_s23, 3 }
  0x90   : > { %s376_s4 = ssub.s32 256, %s505_s6 }
  0x91   : > { %s377_s26 = sshll.u32 %s376_s4, 4 }
  0x92   : > { %378 = vsyncadd %s364_s8, %s377_s26  ;;  %p1026_p5 = scmp.ne.s32.totalorder %s505_s6, 0  ;;  %s514_s30 = sshll.u32 %s767_s13, 8 }
  0x93   : > { %s381_s17 = scalar_lea.hbm %s1082_s2, %s514_s30  ;;  %s383_s25 = sshll.u32 %s928_s20, 4  ;;  %s1035_s25 = int_to_ptr.vmem [resolvable:$true] %s383_s25 }
  0x94   : > { %s385_s28 = sshll.u32 %s381_s17, 4  ;;  %s509_s29 = sshll.u32 %s1102_s23, 7  ;;  %s1037_s28 = int_to_ptr.hbm [resolvable:$true] %s385_s28 }
  0x95   : > { %s639_s5 = sshra.s32 %s1035_s25, 4  ;;  %s641_s19 = sshrl.u32 %s509_s29, 4  ;;  %s640_s5 = int_to_ptr.vmem [resolvable:$true] %s639_s5 }
  0x96   : > { %s646_s3 = scalar_lea.vmem %s640_s5, %s641_s19  ;;  %s728_s13 = smov [#allocation7]  }
  0x97   : > { %p647_p9 = scmp.ne.s32.totalorder %s640_s5, %s646_s3  ;;  %s650_s7 = scalar_lea.vmem %s728_s13, 512 }
  0x98   : > { %p652_p8 = scmp.lt.s32.totalorder %s650_s7, %s646_s3 }
  0x99   : > { %p648_p4 = pnand %p647_p9, %p1026_p5 }
  0x9b   : > { %p649_p7 = pneg %p648_p4 }
  0x9d   : > { %p654_p12 = pnand %p652_p8, %p649_p7 }
  0x9f   : > { %657 = shalt.err (!%p654_p12)
}
  0xa0   : > { %s658_s20 = sshra.s32 %s1037_s28, 4  ;;  %s669_s26 = scalar_lea.hbm %s1082_s2, 400  ;;  %s659_s20 = int_to_ptr.hbm [resolvable:$true] %s658_s20 }
  0xa1   : > { %s665_s27 = scalar_lea.hbm %s659_s20, %s641_s19  ;;  %p670_p11 = scmp.lt.s32.totalorder %s659_s20, %s1082_s2 }
  0xa2   : > { %p666_p0 = scmp.ne.s32.totalorder %s659_s20, %s665_s27  ;;  %p671_p13 = scmp.lt.s32.totalorder %s669_s26, %s665_s27 }
  0xa4   : > { %p667_p1 = pnand %p666_p0, %p1026_p5  ;;  %p672_p2 = por %p671_p13, %p670_p11 }
  0xa6   : > { %p668_p10 = pneg %p667_p1 }
  0xa8   : > { %p673_p3 = pnand %p672_p2, %p668_p10 }
  0xaa   : > { %676 = shalt.err (!%p673_p3)
}
  0xab   : > { %s729_s16 = smov 128   ;;  %s730_s17 = smov 8  }
  0xac   : > { %391 = dma.vmem_to_hbm [thread:$0]  (%p1026_p5), %s1035_s25, %s509_s29, %s1037_s28, %s364_s8, %s729_s16, %s729_s16, %s730_s17  }
  0xad PF: > { %s400_s5 = sand.u32 1, %s708_s9   ;;  %p1091_p6 = scmp.ne.s32.totalorder %s1087_s22, 0 }
  0xae   : > { %p1092_p9 = scmp.ge.s32.totalorder %s720_s12, 2  ;;  %s401_s19 = scalar_lea.sflag [#allocation4], %s400_s5 }
  0xb0   : > { %p519_p4 = pnand %p1092_p9, %p1091_p6 }
  0xb2   : > { %p520_p7 = pneg %p519_p4 }
  0xb4   : > { %703 = dma.done.wait (%p520_p7), %s401_s19, 4096  }
  0xb5   : > { %705 = vsyncadd (%p520_p7), %s401_s19, 4294963200  ;;  %p18_p8 = scmp.ge.s32.totalorder %s771_s15, 4   ;;  %s1093_s9 = smov %s712_s10 }
  0xb6   : > { %s1094_s10 = smov %s716_s11  ;;  %s1095_s11 = smov %s783_s18 }
  0xb7   : > { %s1096_s12 = smov %s771_s15  ;;  %20 = sbr.rel (!%p18_p8) target bundleno = 7 (0x7), region = 86 }
  0xbc   :  { %407 = vsyncpa [#allocation3], 1 }
  0xbd   :  { %409 = vsyncpa [#allocation3 + $0x1], 1 }
  0xbe   :  { %410 = vsyncpa [#allocation6], 1 }
  0xbf   :  { %412 = vsyncpa [#allocation6 + $0x1], 1 }
  0xc0   :  { %413 = vsyncpa [#allocation4], 1 }
  0xc1   :  { %415 = vsyncpa [#allocation4 + $0x1], 1 }

</bundles_post_ra>
